<compile_context>
chip_gen: v7x
topology: tpu7x:2x2x1
jax: 0.10.0
libtpu: 0.0.40
codegen_flags: <defaults>
</compile_context>

<pallas_src>
import functools

import jax
import jax.numpy as jnp
from jax.experimental import pallas as pl
from jax.experimental.pallas import tpu as pltpu

_LANE = 128
_F32_SUBLANE = 8


def _round_down(x, m):
    return (x // m) * m


def _detect_num_tensorcores():
    """Best-effort TensorCore count (2 on v7x, 1 on v5e/v6e). Defaults to 1."""
    try:
        info = pltpu.get_tpu_info()
    except Exception:
        return 1
    for name in ("num_cores", "core_count", "num_tensor_cores", "tensorcore_count"):
        v = getattr(info, name, None)
        if isinstance(v, int) and v >= 1:
            return v
    return 1


# ----------------------------------------------------------------------------
# Fast path: numel divisible by 128 -> zero-copy (M, lanes) view.
# ----------------------------------------------------------------------------
def _fast_kernel(pred_ref, real_ref, out_ref, *, tm, lanes, acc_rows,
                 blocks_per_split, m_valid, needs_mask):
    # Zero the resident output block at the start of each core's reduction.
    @pl.when(pl.program_id(1) == 0)
    def _():
        out_ref[...] = jnp.zeros_like(out_ref)

    d = real_ref[...].astype(jnp.float32) - pred_ref[...].astype(jnp.float32)
    sq = d * d

    if needs_mask:
        # Mask rows past the valid extent (logical index; DMA index is clamped
        # in the BlockSpec index_map so no OOB transfer is ever issued).
        block_idx = pl.program_id(0) * blocks_per_split + pl.program_id(1)
        rows = jax.lax.broadcasted_iota(jnp.int32, (tm, lanes), 0) + block_idx * tm
        sq = jnp.where(rows < m_valid, sq, 0.0)

    # Deferred reduce: fold sublane-groups into the resident (acc_rows, lanes)
    # output block -- VPU-only on the loop-carried dependency, no per-step XLU.
    if tm == acc_rows:
        out_ref[...] += sq
    else:
        out_ref[...] += jnp.sum(sq.reshape(tm // acc_rows, acc_rows, lanes), axis=0)


def _mse_fast(flat_p, flat_r, n, lanes, itemsize, block_bytes, num_splits,
              input_buffers, cost):
    m = n // lanes
    p2 = flat_p.reshape(m, lanes)   # contiguous -> zero-copy reshape
    r2 = flat_r.reshape(m, lanes)

    # Sublane pack of the *input* dtype: 8 (f32), 16 (bf16), 32 (int8/fp8).
    pack = max(1, 4 // itemsize)
    sublane = _F32_SUBLANE * pack

    target_rows = max(sublane, block_bytes // (lanes * itemsize))
    if m <= target_rows:
        tm = m                                        # full row dim (always legal)
    else:
        tm = max(sublane, _round_down(target_rows, sublane))

    m_blocks = pl.cdiv(m, tm)

    if num_splits is None:
        num_splits = _detect_num_tensorcores()
    if num_splits < 1 or m_blocks < num_splits:
        num_splits = 1
    blocks_per_split = pl.cdiv(m_blocks, num_splits)

    needs_mask = (num_splits * blocks_per_split * tm) != m
    acc_rows = _F32_SUBLANE if tm % _F32_SUBLANE == 0 else tm
    last_block = m_blocks - 1

    kernel = functools.partial(
        _fast_kernel, tm=tm, lanes=lanes, acc_rows=acc_rows,
        blocks_per_split=blocks_per_split, m_valid=m, needs_mask=needs_mask)

    def in_idx_map(c, i):
        # Clamp so a rounding-induced extra block re-reads valid data (its
        # contribution is zeroed by the in-kernel row mask).
        return (jnp.minimum(c * blocks_per_split + i, last_block), 0)

    spec_kwargs = {}
    if input_buffers is not None and input_buffers != 2:
        spec_kwargs = dict(pipeline_mode=pl.Buffered(input_buffers))  # e.g. 3 on v7x
    in_spec = pl.BlockSpec((tm, lanes), in_idx_map, **spec_kwargs)

    # VMEM budget: 2 inputs x buffers x block + resident output slab.
    buffers = input_buffers if input_buffers is not None else 2
    est_vmem = 2 * buffers * tm * lanes * itemsize + num_splits * acc_rows * lanes * 4
    vmem_limit = None
    if est_vmem > 12 * 1024 * 1024:
        # Stay well under v7x's 64 MiB physical VMEM per TensorCore.
        vmem_limit = int(min(48 * 1024 * 1024, 2 * est_vmem + 8 * 1024 * 1024))

    partial_sums = pl.pallas_call(
        kernel,
        out_shape=jax.ShapeDtypeStruct((num_splits * acc_rows, lanes), jnp.float32),
        grid_spec=pltpu.PrefetchScalarGridSpec(
            num_scalar_prefetch=0,
            grid=(num_splits, blocks_per_split),
            in_specs=[in_spec, in_spec],
            out_specs=pl.BlockSpec((acc_rows, lanes), lambda c, i: (c, 0)),
        ),
        compiler_params=pltpu.CompilerParams(
            dimension_semantics=("parallel", "arbitrary"),
            vmem_limit_bytes=vmem_limit,
        ),
        cost_estimate=cost,
    )(p2, r2)

    # Tiny final cross-lane reduce + mean in plain JAX.
    return jnp.sum(partial_sums) / n


# ----------------------------------------------------------------------------
# Ragged path: numel not divisible by 128 -> (1, N) view, lane chunks.
# Avoids the full-array pad copy; the tail chunk is masked in-kernel.
# ----------------------------------------------------------------------------
def _ragged_kernel(pred_ref, real_ref, out_ref, *, chunk, n_valid, needs_mask):
    @pl.when(pl.program_id(0) == 0)
    def _():
        out_ref[...] = jnp.zeros_like(out_ref)

    d = real_ref[...].astype(jnp.float32) - pred_ref[...].astype(jnp.float32)
    sq = d * d
    if needs_mask:
        cols = (jax.lax.broadcasted_iota(jnp.int32, (1, chunk), 1)
                + pl.program_id(0) * chunk)
        sq = jnp.where(cols < n_valid, sq, 0.0)
    out_ref[...] += sq


def _mse_ragged(flat_p, flat_r, n, block_bytes, cost):
    # TODO(synk): (1, chunk) tiles occupy 1 of 8 sublanes per vreg; this path
    # is only reached when numel is not a multiple of 128 (rare for real
    # model tensors) and trades some VPU efficiency for zero extra HBM copies.
    itemsize = max(flat_p.dtype.itemsize, flat_r.dtype.itemsize)
    max_chunk = max(_LANE,
                    _round_down(min(block_bytes, 1024 * 1024) // itemsize, _LANE))
    if n <= max_chunk:
        chunk = n            # single full block; last-dim == full dim is legal
    else:
        chunk = max_chunk    # multiple of 128; ragged tail masked in-kernel

    num_chunks = pl.cdiv(n, chunk)
    needs_mask = (num_chunks * chunk) != n

    p2 = flat_p.reshape(1, n)
    r2 = flat_r.reshape(1, n)

    kernel = functools.partial(_ragged_kernel, chunk=chunk, n_valid=n,
                               needs_mask=needs_mask)

    partial_sums = pl.pallas_call(
        kernel,
        out_shape=jax.ShapeDtypeStruct((1, chunk), jnp.float32),
        grid_spec=pltpu.PrefetchScalarGridSpec(
            num_scalar_prefetch=0,
            grid=(num_chunks,),
            in_specs=[pl.BlockSpec((1, chunk), lambda i: (0, i)),
                      pl.BlockSpec((1, chunk), lambda i: (0, i))],
            out_specs=pl.BlockSpec((1, chunk), lambda i: (0, 0)),
        ),
        compiler_params=pltpu.CompilerParams(
            dimension_semantics=("arbitrary",),
        ),
        cost_estimate=cost,
    )(p2, r2)

    return jnp.sum(partial_sums) / n


# ----------------------------------------------------------------------------
# Public wrapper (forward of the PyTorch MSE module).
# ----------------------------------------------------------------------------
def mse_pallas(pred, real, *, block_bytes=2 * 1024 * 1024, num_splits=None,
               input_buffers=None):
    """mse = sum((real - pred)**2) / numel, computed with Pallas TPU kernels."""
    assert pred.shape == real.shape, "pred/real must have identical shapes"
    n = int(pred.size)
    assert n > 0

    flat_p = jnp.ravel(pred)
    flat_r = jnp.ravel(real)
    itemsize = max(flat_p.dtype.itemsize, flat_r.dtype.itemsize)

    cost = pl.CostEstimate(flops=3 * n, transcendentals=0,
                           bytes_accessed=2 * n * itemsize)

    lanes = next((L for L in (1024, 512, 256, 128) if n % L == 0), None)
    if lanes is None:
        return _mse_ragged(flat_p, flat_r, n, block_bytes, cost)
    return _mse_fast(flat_p, flat_r, n, lanes, itemsize, block_bytes,
                     num_splits, input_buffers, cost)


if __name__ == "__main__":
    key = jax.random.PRNGKey(0)
    k1, k2, k3, k4, k5, k6 = jax.random.split(key, 6)

    # Small NCHW-style inputs (128-divisible numel -> fast tiled path).
    pred = jax.random.normal(k1, (2, 4, 16, 16), dtype=jnp.float32)
    real = jax.random.normal(k2, (2, 4, 16, 16), dtype=jnp.float32)
    mse = mse_pallas(pred, real)
    jax.block_until_ready(mse)
    ref = jnp.sum((real - pred) ** 2) / pred.size
    assert jnp.allclose(mse, ref, rtol=1e-5, atol=1e-6), (mse, ref)

    # Non-128-divisible numel exercises the no-copy ragged path.
    pred2 = jax.random.normal(k3, (3, 5, 7, 11), dtype=jnp.float32)
    real2 = jax.random.normal(k4, (3, 5, 7, 11), dtype=jnp.float32)
    mse2 = mse_pallas(pred2, real2)
    jax.block_until_ready(mse2)
    ref2 = jnp.sum((real2 - pred2) ** 2) / pred2.size
    assert jnp.allclose(mse2, ref2, rtol=1e-5, atol=1e-6), (mse2, ref2)

    # bf16 inputs exercise the in-kernel f32 upcast (native-dtype DMA).
    pred3 = jax.random.normal(k5, (2, 4, 16, 16), dtype=jnp.bfloat16)
    real3 = jax.random.normal(k6, (2, 4, 16, 16), dtype=jnp.bfloat16)
    mse3 = mse_pallas(pred3, real3)
    jax.block_until_ready(mse3)
    d3 = real3.astype(jnp.float32) - pred3.astype(jnp.float32)
    ref3 = jnp.sum(d3 * d3) / pred3.size
    assert jnp.allclose(mse3, ref3, rtol=1e-4, atol=1e-6), (mse3, ref3)

    print("KERNEL_OK")
</pallas_src>

<mosaic_0001>
module attributes {stable_mosaic.version = 11 : i64} {
  func.func @_fast_kernel(%arg0: i32, %arg1: i32, %arg2: memref<2x1024xf32, #tpu.memory_space<vmem>>, %arg3: memref<2x1024xf32, #tpu.memory_space<vmem>>, %arg4: memref<2x1024xf32, #tpu.memory_space<vmem>>) attributes {dimension_semantics = [#tpu.dimension_semantics<parallel>, #tpu.dimension_semantics<arbitrary>], iteration_bounds = array<i64: 1, 1>, scalar_prefetch = 0 : i64, scratch_operands = 0 : i64, tpu.core_type = #tpu.core_type<tc>, window_params = [{transform_indices = @transform_0, window_bounds = array<i64: 2, 1024>}, {transform_indices = @transform_1, window_bounds = array<i64: 2, 1024>}, {transform_indices = @transform_2, window_bounds = array<i64: 2, 1024>}]} {
    %c0_i32 = arith.constant 0 : i32
    %0 = arith.cmpi eq, %arg1, %c0_i32 : i32
    %1 = arith.extui %0 : i1 to i32
    %c0_i32_0 = arith.constant 0 : i32
    %2 = arith.cmpi ne, %1, %c0_i32_0 : i32
    scf.if %2 {
      %cst = arith.constant 0.000000e+00 : f32
      %10 = vector.broadcast %cst : f32 to vector<2x1024xf32>
      %c0_8 = arith.constant 0 : index
      %c0_9 = arith.constant 0 : index
      %11 = vector.load %arg4[%c0_8, %c0_9] : memref<2x1024xf32, #tpu.memory_space<vmem>>, vector<2x1024xf32>
      tpu.vector_store %arg4[%c0_8, %c0_9], %10 {strides = array<i32>} : memref<2x1024xf32, #tpu.memory_space<vmem>>, vector<2x1024xf32>,
    } else {
    }
    %c0 = arith.constant 0 : index
    %c0_1 = arith.constant 0 : index
    %3 = vector.load %arg3[%c0, %c0_1] : memref<2x1024xf32, #tpu.memory_space<vmem>>, vector<2x1024xf32>
    %c0_2 = arith.constant 0 : index
    %c0_3 = arith.constant 0 : index
    %4 = vector.load %arg2[%c0_2, %c0_3] : memref<2x1024xf32, #tpu.memory_space<vmem>>, vector<2x1024xf32>
    %5 = arith.subf %3, %4 : vector<2x1024xf32>
    %6 = arith.mulf %5, %5 : vector<2x1024xf32>
    %c0_4 = arith.constant 0 : index
    %c0_5 = arith.constant 0 : index
    %7 = vector.load %arg4[%c0_4, %c0_5] : memref<2x1024xf32, #tpu.memory_space<vmem>>, vector<2x1024xf32>
    %8 = arith.addf %7, %6 : vector<2x1024xf32>
    %c0_6 = arith.constant 0 : index
    %c0_7 = arith.constant 0 : index
    %9 = vector.load %arg4[%c0_6, %c0_7] : memref<2x1024xf32, #tpu.memory_space<vmem>>, vector<2x1024xf32>
    tpu.vector_store %arg4[%c0_6, %c0_7], %8 {strides = array<i32>} : memref<2x1024xf32, #tpu.memory_space<vmem>>, vector<2x1024xf32>,
    return
  }
  func.func @transform_0(%arg0: i32, %arg1: i32) -> (i32, i32) {
    %c1_i32 = arith.constant 1 : i32
    %0 = arith.muli %arg0, %c1_i32 : i32
    %1 = arith.addi %0, %arg1 : i32
    %c0_i32 = arith.constant 0 : i32
    %2 = arith.minsi %1, %c0_i32 : i32
    %c0_i32_0 = arith.constant 0 : i32
    %c0_i32_1 = arith.constant 0 : i32
    return %2, %c0_i32_0 : i32, i32
  }
  func.func @transform_1(%arg0: i32, %arg1: i32) -> (i32, i32) {
    %c1_i32 = arith.constant 1 : i32
    %0 = arith.muli %arg0, %c1_i32 : i32
    %1 = arith.addi %0, %arg1 : i32
    %c0_i32 = arith.constant 0 : i32
    %2 = arith.minsi %1, %c0_i32 : i32
    %c0_i32_0 = arith.constant 0 : i32
    %c0_i32_1 = arith.constant 0 : i32
    return %2, %c0_i32_0 : i32, i32
  }
  func.func @transform_2(%arg0: i32, %arg1: i32) -> (i32, i32) {
    %c0_i32 = arith.constant 0 : i32
    %c0_i32_0 = arith.constant 0 : i32
    return %arg0, %c0_i32 : i32, i32
  }
}

</mosaic_0001>

<bundles_post_ra>
// kernel: tpu_custom_call.1
= control target key start
LH: loop header
LB: loop body
LE: loop exit
PB: predicated region body
PF: predicated region fallthrough
CT: control target
= control target key end

     0   :  { %7 = vsyncpa [#allocation3], 0  ;;  %s224_s0 = inlined_call_operand.hbm [shape: f32[2,1024], index: 0, kind: input, shape index: {}]   ;;  %s225_s1 = inlined_call_operand.hbm [shape: f32[2,1024], index: 1, kind: input, shape index: {}]   ;;  %s226_s2 = inlined_call_operand.hbm [shape: f32[2,1024], index: 2, kind: output, shape index: {}]  }
   0x1   :  { %8 = vsyncpa [#allocation6], 0 }
   0x2   :  { %9 = vsyncpa [#allocation4], 0  ;;  %s170_s9 = smov [#allocation2]   ;;  %s171_s11 = smov [#allocation5]  }
   0x3   :  { %s22_s10 = sshll.u32 %s170_s9, 4  ;;  %s38_s12 = sshll.u32 %s171_s11, 4  ;;  %s23_s10 = int_to_ptr.vmem [resolvable:$true] %s22_s10  ;;  %s39_s12 = int_to_ptr.vmem [resolvable:$true] %s38_s12 }
   0x4   :  { %s98_s15 = scalar_lea.hbm %s224_s0, 256 }
   0x5   :  { %p99_p0 = scmp.ne.s32.totalorder %s224_s0, %s98_s15  ;;  %p102_p1 = scmp.lt.u32.totalorder %s98_s15, %s224_s0 }
   0x7   :  { %p104_p2 = pnand %p102_p1, %p99_p0 }
   0x9   :  { %107 = shalt.err (!%p104_p2)
}
   0xa   :  { %s108_s20 = scalar_lea.vmem %s23_s10, 256  ;;  %p113_p4 = scmp.lt.s32.totalorder %s23_s10, %s23_s10 }
   0xb   :  { %p109_p3 = scmp.ne.s32.totalorder %s23_s10, %s108_s20  ;;  %p114_p5 = scmp.lt.s32.totalorder %s108_s20, %s108_s20 }
   0xd   :  { %p115_p6 = por %p114_p5, %p113_p4 }
   0xf   :  { %p116_p7 = pnand %p115_p6, %p109_p3 }
  0x11   :  { %119 = shalt.err (!%p116_p7)
}
  0x12   :  { %25 = dma.hbm_to_vmem [thread:$0]  %s224_s0, 256, %s23_s10, [#allocation3]  }
  0x13   :  { %s120_s25 = scalar_lea.hbm %s225_s1, 256 }
  0x14   :  { %p121_p8 = scmp.ne.s32.totalorder %s225_s1, %s120_s25  ;;  %p124_p9 = scmp.lt.u32.totalorder %s120_s25, %s225_s1 }
  0x16   :  { %p126_p10 = pnand %p124_p9, %p121_p8 }
  0x18   :  { %129 = shalt.err (!%p126_p10)
}
  0x19   :  { %s130_s30 = scalar_lea.vmem %s39_s12, 256  ;;  %p135_p12 = scmp.lt.s32.totalorder %s39_s12, %s39_s12 }
  0x1a   :  { %p131_p11 = scmp.ne.s32.totalorder %s39_s12, %s130_s30  ;;  %p136_p13 = scmp.lt.s32.totalorder %s130_s30, %s130_s30 }
  0x1c   :  { %p137_p0 = por %p136_p13, %p135_p12 }
  0x1e   :  { %p138_p1 = pnand %p137_p0, %p131_p11 }
  0x20   :  { %141 = shalt.err (!%p138_p1)
}
  0x21   :  { %41 = dma.hbm_to_vmem [thread:$0]  %s225_s1, 256, %s39_s12, [#allocation6]  }
  0x22   :  { %164 = dma.done.wait [#allocation3], 256  }
  0x23   :  { %165 = vsyncadd [#allocation3], 4294967040 }
  0x24   :  { %166 = dma.done.wait [#allocation6], 256  }
  0x25   :  { %167 = vsyncadd [#allocation6], 4294967040  ;;  %v60_v0 = vld [vmem:[#allocation5] sm:$0xff]  ;;  %v62_v1 = vld [vmem:[#allocation2] sm:$0xff]  ;;  %s172_s4 = smov [#allocation7]  }
  0x26   :  { %v61_v2 = vld [vmem:[#allocation5 + $0x8] sm:$0xff]  ;;  %v64_v3 = vsub.f32 %v60_v0, %v62_v1  ;;  %v63_v4 = vld [vmem:[#allocation2 + $0x8] sm:$0xff]  ;;  %s80_s5 = sshll.u32 %s172_s4, 4  ;;  %s81_s5 = int_to_ptr.vmem [resolvable:$true] %s80_s5 }
  0x27   :  { %v65_v5 = vsub.f32 %v61_v2, %v63_v4  ;;  %s142_s6 = scalar_lea.vmem %s81_s5, 256  ;;  %p147_p3 = scmp.lt.s32.totalorder %s81_s5, %s81_s5 }
  0x28   :  { %v66_v6 = vmul.f32 %v64_v3, %v64_v3  ;;  %p143_p2 = scmp.ne.s32.totalorder %s81_s5, %s142_s6  ;;  %p148_p4 = scmp.lt.s32.totalorder %s142_s6, %s142_s6 }
  0x29   :  { %v67_v7 = vmul.f32 %v65_v5, %v65_v5 }
  0x2a   :  { %72 = vst [vmem:[#allocation7] sm:$0xff] %v66_v6  ;;  %p149_p5 = por %p148_p4, %p147_p3 }
  0x2b   :  { %73 = vst [vmem:[#allocation7 + $0x8] sm:$0xff] %v67_v7 }
  0x2c   :  { %p150_p6 = pnand %p149_p5, %p143_p2 }
  0x2e   :  { %153 = shalt.err (!%p150_p6)
}
  0x2f   :  { %s154_s8 = scalar_lea.hbm %s226_s2, 256 }
  0x30   :  { %p155_p7 = scmp.ne.s32.totalorder %s226_s2, %s154_s8  ;;  %p158_p8 = scmp.lt.u32.totalorder %s154_s8, %s226_s2 }
  0x32   :  { %p160_p9 = pnand %p158_p8, %p155_p7 }
  0x34   :  { %163 = shalt.err (!%p160_p9)
}
  0x35   :  { %83 = dma.vmem_to_hbm [thread:$0]  %s81_s5, 256, %s226_s2, [#allocation4]  }
  0x36   :  { %168 = dma.done.wait [#allocation4], 256  }
  0x37   :  { %169 = vsyncadd [#allocation4], 4294967040 }
  0x38   :  { %87 = vsyncpa [#allocation3], 1 }
  0x39   :  { %88 = vsyncpa [#allocation6], 1 }
  0x3a   :  { %89 = vsyncpa [#allocation4], 1 }

</bundles_post_ra>
